<compile_context>
chip_gen: v7x
topology: tpu7x:2x2x1
jax: 0.10.0
libtpu: 0.0.40
codegen_flags: <defaults>
</compile_context>

<pallas_src>
import jax
import jax.numpy as jnp
from jax.experimental import pallas as pl
from jax.experimental.pallas import tpu as pltpu

IN_DIM = 28 * 28   # 784 (multiple of 8 -> fine as w1 sublane dim; full-extent lane dim for x)
H1 = 128           # fc1 out
H2 = 64            # fc2 out
OUT = 10           # fc3 out (logits)

MAX_TILE_B = 1024  # rows per grid step (multiple of 16)
MIN_SPLIT_B = 256  # once each half-tile would be this big, force >=2 grid steps (v7x 2nd TC)


def _round_up(n, m):
    return ((n + m - 1) // m) * m


def mlp_kernel(x_ref, w1_ref, b1_ref, w2_ref, b2_ref, w3_ref, b3_ref, o_ref):
    # f32 -> bf16 cast of the streamed x tile done in-kernel (VPU cast, hidden under DMA).
    x = x_ref[...].astype(jnp.bfloat16)
    # fc1 + ReLU (bf16 operands, f32 accumulation on the MXU)
    h1 = jnp.dot(x, w1_ref[...], preferred_element_type=jnp.float32)
    h1 = jnp.maximum(h1 + b1_ref[...], 0.0).astype(jnp.bfloat16)
    # fc2 + ReLU
    h2 = jnp.dot(h1, w2_ref[...], preferred_element_type=jnp.float32)
    h2 = jnp.maximum(h2 + b2_ref[...], 0.0).astype(jnp.bfloat16)
    # fc3 (no activation); written directly to the narrow (tile_b, 10) output block.
    o_ref[...] = (jnp.dot(h2, w3_ref[...], preferred_element_type=jnp.float32)
                  + b3_ref[...]).astype(o_ref.dtype)


def prepare_params(params):
    """One-time conversion of (in, out)-shaped params to kernel dtypes.

    Call this ONCE outside the forward (hoisted per perf review): weights -> bf16,
    biases -> (1, N) f32. No zero-padding is needed anywhere.
    """
    w1, b1, w2, b2, w3, b3 = params
    return (w1.astype(jnp.bfloat16), b1.reshape(1, H1).astype(jnp.float32),
            w2.astype(jnp.bfloat16), b2.reshape(1, H2).astype(jnp.float32),
            w3.astype(jnp.bfloat16), b3.reshape(1, OUT).astype(jnp.float32))


@jax.jit
def simple_nn_forward(x, kparams):
    """x: (B, 1, 28, 28) or (B, 784) float32. kparams: prepare_params(...) output.
    Returns (B, 10) float32 logits."""
    w1, b1, w2, b2, w3, b3 = kparams
    x2d = x.reshape(-1, IN_DIM).astype(jnp.float32)
    B = x2d.shape[0]

    # Tile selection: multiple of 16; >=2 grid steps once the batch is big enough
    # (lets the "parallel" axis shard across v7x's two TensorCores); pad waste is
    # bounded to <16 rows per tile and handled by a ragged (masked) last tile.
    b16 = _round_up(B, 16)
    n_tiles = pl.cdiv(b16, MAX_TILE_B)
    if n_tiles == 1 and b16 >= 2 * MIN_SPLIT_B:
        n_tiles = 2
    tile_b = _round_up(pl.cdiv(b16, n_tiles), 16)
    grid = (pl.cdiv(B, tile_b),)

    cost = pl.CostEstimate(
        flops=2 * B * (IN_DIM * H1 + H1 * H2 + H2 * OUT),
        transcendentals=0,
        bytes_accessed=(B * IN_DIM * 4                                   # x (f32, read once)
                        + (IN_DIM * H1 + H1 * H2 + H2 * OUT) * 2         # weights (bf16)
                        + (H1 + H2 + OUT) * 4                            # biases (f32)
                        + B * OUT * 4),                                  # logits (f32)
    )

    out = pl.pallas_call(
        mlp_kernel,
        out_shape=jax.ShapeDtypeStruct((B, OUT), jnp.float32),
        grid=grid,
        in_specs=[
            pl.BlockSpec((tile_b, IN_DIM), lambda i: (i, 0)),   # x: streamed per batch tile
            pl.BlockSpec((IN_DIM, H1), lambda i: (0, 0)),       # w1: VMEM-resident
            pl.BlockSpec((1, H1), lambda i: (0, 0)),            # b1
            pl.BlockSpec((H1, H2), lambda i: (0, 0)),           # w2
            pl.BlockSpec((1, H2), lambda i: (0, 0)),            # b2
            pl.BlockSpec((H2, OUT), lambda i: (0, 0)),          # w3
            pl.BlockSpec((1, OUT), lambda i: (0, 0)),           # b3
        ],
        out_specs=pl.BlockSpec((tile_b, OUT), lambda i: (i, 0)),
        compiler_params=pltpu.CompilerParams(
            dimension_semantics=("parallel",),
            vmem_limit_bytes=32 * 1024 * 1024),
        cost_estimate=cost,
    )(x2d, w1, b1, w2, b2, w3, b3)
    return out


def init_params(key):
    """Deterministic init mimicking nn.Linear's uniform(-1/sqrt(fan_in), ...).
    Stored as (in, out) so the kernel computes x @ W + b."""
    def linear(key, fan_in, fan_out):
        kw, kb = jax.random.split(key)
        bound = 1.0 / jnp.sqrt(fan_in)
        w = jax.random.uniform(kw, (fan_in, fan_out), jnp.float32, -bound, bound)
        b = jax.random.uniform(kb, (1, fan_out), jnp.float32, -bound, bound)
        return w, b

    k1, k2, k3 = jax.random.split(key, 3)
    w1, b1 = linear(k1, IN_DIM, H1)
    w2, b2 = linear(k2, H1, H2)
    w3, b3 = linear(k3, H2, OUT)
    return (w1, b1, w2, b2, w3, b3)


def reference_forward_bf16(x, params):
    """Plain-JAX reference mirroring the kernel's bf16-operand / f32-accum math."""
    w1, b1, w2, b2, w3, b3 = params
    x2d = x.reshape(-1, IN_DIM).astype(jnp.bfloat16)
    h1 = jnp.dot(x2d, w1.astype(jnp.bfloat16), preferred_element_type=jnp.float32) + b1
    h1 = jnp.maximum(h1, 0.0).astype(jnp.bfloat16)
    h2 = jnp.dot(h1, w2.astype(jnp.bfloat16), preferred_element_type=jnp.float32) + b2
    h2 = jnp.maximum(h2, 0.0).astype(jnp.bfloat16)
    return jnp.dot(h2, w3.astype(jnp.bfloat16), preferred_element_type=jnp.float32) + b3


def reference_forward_f32(x, params):
    """Full-precision reference matching the PyTorch forward (logits, no softmax)."""
    w1, b1, w2, b2, w3, b3 = params
    x2d = x.reshape(-1, IN_DIM)
    h1 = jnp.maximum(x2d @ w1 + b1, 0.0)
    h2 = jnp.maximum(h1 @ w2 + b2, 0.0)
    return h2 @ w3 + b3


if __name__ == "__main__":
    key = jax.random.PRNGKey(0)
    kx, kp = jax.random.split(key)

    B = 8
    x = jax.random.normal(kx, (B, 1, 28, 28), dtype=jnp.float32)
    params = init_params(kp)
    kparams = prepare_params(params)   # one-time weight cast, hoisted out of the forward

    out = simple_nn_forward(x, kparams)
    out = jax.block_until_ready(out)
    assert out.shape == (B, 10), out.shape

    # Compare against a bf16-matched reference (kernel uses bf16 operands),
    # plus a loose sanity check against the full-f32 PyTorch-equivalent math.
    ref_bf16 = reference_forward_bf16(x, params)
    ref_f32 = reference_forward_f32(x, params)
    assert jnp.allclose(out, ref_bf16, atol=1e-2, rtol=1e-2), "mismatch vs bf16 reference"
    assert jnp.allclose(out, ref_f32, atol=5e-2, rtol=5e-2), "mismatch vs f32 reference"

    print("KERNEL_OK")
</pallas_src>

<mosaic_0001>
module attributes {stable_mosaic.version = 11 : i64} {
  func.func @mlp_kernel(%arg0: i32, %arg1: memref<16x784xf32, #tpu.memory_space<vmem>>, %arg2: memref<784x128xbf16, #tpu.memory_space<vmem>>, %arg3: memref<1x128xf32, #tpu.memory_space<vmem>>, %arg4: memref<128x64xbf16, #tpu.memory_space<vmem>>, %arg5: memref<1x64xf32, #tpu.memory_space<vmem>>, %arg6: memref<64x10xbf16, #tpu.memory_space<vmem>>, %arg7: memref<1x10xf32, #tpu.memory_space<vmem>>, %arg8: memref<16x10xf32, #tpu.memory_space<vmem>>) attributes {dimension_semantics = [#tpu.dimension_semantics<parallel>], iteration_bounds = array<i64: 1>, scalar_prefetch = 0 : i64, scratch_operands = 0 : i64, tpu.core_type = #tpu.core_type<tc>, window_params = [{transform_indices = @transform_0, window_bounds = array<i64: 16, 784>}, {pipeline_mode = #tpu.pipeline_mode<synchronous>, transform_indices = @transform_1, window_bounds = array<i64: 784, 128>}, {pipeline_mode = #tpu.pipeline_mode<synchronous>, transform_indices = @transform_2, window_bounds = array<i64: 1, 128>}, {pipeline_mode = #tpu.pipeline_mode<synchronous>, transform_indices = @transform_3, window_bounds = array<i64: 128, 64>}, {pipeline_mode = #tpu.pipeline_mode<synchronous>, transform_indices = @transform_4, window_bounds = array<i64: 1, 64>}, {pipeline_mode = #tpu.pipeline_mode<synchronous>, transform_indices = @transform_5, window_bounds = array<i64: 64, 10>}, {pipeline_mode = #tpu.pipeline_mode<synchronous>, transform_indices = @transform_6, window_bounds = array<i64: 1, 10>}, {transform_indices = @transform_7, window_bounds = array<i64: 16, 10>}]} {
    %c0 = arith.constant 0 : index
    %c0_0 = arith.constant 0 : index
    %0 = vector.load %arg1[%c0, %c0_0] : memref<16x784xf32, #tpu.memory_space<vmem>>, vector<16x784xf32>
    %1 = arith.truncf %0 : vector<16x784xf32> to vector<16x784xbf16>
    %c0_1 = arith.constant 0 : index
    %c0_2 = arith.constant 0 : index
    %2 = vector.load %arg2[%c0_1, %c0_2] : memref<784x128xbf16, #tpu.memory_space<vmem>>, vector<784x128xbf16>
    %cst = arith.constant dense<0.000000e+00> : vector<16x128xf32>
    %3 = tpu.matmul %1, %2, %cst {dimension_numbers = #tpu.dot_dimension_numbers<[1], [0], [0], [1], [0, 0, 1, 1], [], []>} : vector<16x784xbf16>, vector<784x128xbf16>, vector<16x128xf32> -> vector<16x128xf32>
    %c0_3 = arith.constant 0 : index
    %c0_4 = arith.constant 0 : index
    %4 = vector.load %arg3[%c0_3, %c0_4] : memref<1x128xf32, #tpu.memory_space<vmem>>, vector<1x128xf32>
    %5 = vector.broadcast %4 : vector<1x128xf32> to vector<16x128xf32>
    %6 = arith.addf %3, %5 : vector<16x128xf32>
    %cst_5 = arith.constant 0.000000e+00 : f32
    %7 = vector.broadcast %cst_5 : f32 to vector<16x128xf32>
    %8 = arith.maximumf %6, %7 : vector<16x128xf32>
    %9 = arith.truncf %8 : vector<16x128xf32> to vector<16x128xbf16>
    %c0_6 = arith.constant 0 : index
    %c0_7 = arith.constant 0 : index
    %10 = vector.load %arg4[%c0_6, %c0_7] : memref<128x64xbf16, #tpu.memory_space<vmem>>, vector<128x64xbf16>
    %cst_8 = arith.constant dense<0.000000e+00> : vector<16x64xf32>
    %11 = tpu.matmul %9, %10, %cst_8 {dimension_numbers = #tpu.dot_dimension_numbers<[1], [0], [0], [1], [0, 0, 1, 1], [], []>} : vector<16x128xbf16>, vector<128x64xbf16>, vector<16x64xf32> -> vector<16x64xf32>
    %c0_9 = arith.constant 0 : index
    %c0_10 = arith.constant 0 : index
    %12 = vector.load %arg5[%c0_9, %c0_10] : memref<1x64xf32, #tpu.memory_space<vmem>>, vector<1x64xf32>
    %13 = vector.broadcast %12 : vector<1x64xf32> to vector<16x64xf32>
    %14 = arith.addf %11, %13 : vector<16x64xf32>
    %cst_11 = arith.constant 0.000000e+00 : f32
    %15 = vector.broadcast %cst_11 : f32 to vector<16x64xf32>
    %16 = arith.maximumf %14, %15 : vector<16x64xf32>
    %17 = arith.truncf %16 : vector<16x64xf32> to vector<16x64xbf16>
    %c0_12 = arith.constant 0 : index
    %c0_13 = arith.constant 0 : index
    %18 = vector.load %arg6[%c0_12, %c0_13] : memref<64x10xbf16, #tpu.memory_space<vmem>>, vector<64x10xbf16>
    %cst_14 = arith.constant dense<0.000000e+00> : vector<16x10xf32>
    %19 = tpu.matmul %17, %18, %cst_14 {dimension_numbers = #tpu.dot_dimension_numbers<[1], [0], [0], [1], [0, 0, 1, 1], [], []>} : vector<16x64xbf16>, vector<64x10xbf16>, vector<16x10xf32> -> vector<16x10xf32>
    %c0_15 = arith.constant 0 : index
    %c0_16 = arith.constant 0 : index
    %20 = vector.load %arg7[%c0_15, %c0_16] : memref<1x10xf32, #tpu.memory_space<vmem>>, vector<1x10xf32>
    %21 = vector.broadcast %20 : vector<1x10xf32> to vector<16x10xf32>
    %22 = arith.addf %19, %21 : vector<16x10xf32>
    %c0_17 = arith.constant 0 : index
    %c0_18 = arith.constant 0 : index
    %23 = vector.load %arg8[%c0_17, %c0_18] : memref<16x10xf32, #tpu.memory_space<vmem>>, vector<16x10xf32>
    tpu.vector_store %arg8[%c0_17, %c0_18], %22 {strides = array<i32>} : memref<16x10xf32, #tpu.memory_space<vmem>>, vector<16x10xf32>,
    return
  }
  func.func @transform_0(%arg0: i32) -> (i32, i32) {
    %c0_i32 = arith.constant 0 : i32
    %c0_i32_0 = arith.constant 0 : i32
    return %arg0, %c0_i32 : i32, i32
  }
  func.func @transform_1(%arg0: i32) -> (i32, i32) {
    %c0_i32 = arith.constant 0 : i32
    %c0_i32_0 = arith.constant 0 : i32
    %c0_i32_1 = arith.constant 0 : i32
    return %c0_i32, %c0_i32_0 : i32, i32
  }
  func.func @transform_2(%arg0: i32) -> (i32, i32) {
    %c0_i32 = arith.constant 0 : i32
    %c0_i32_0 = arith.constant 0 : i32
    %c0_i32_1 = arith.constant 0 : i32
    return %c0_i32, %c0_i32_0 : i32, i32
  }
  func.func @transform_3(%arg0: i32) -> (i32, i32) {
    %c0_i32 = arith.constant 0 : i32
    %c0_i32_0 = arith.constant 0 : i32
    %c0_i32_1 = arith.constant 0 : i32
    return %c0_i32, %c0_i32_0 : i32, i32
  }
  func.func @transform_4(%arg0: i32) -> (i32, i32) {
    %c0_i32 = arith.constant 0 : i32
    %c0_i32_0 = arith.constant 0 : i32
    %c0_i32_1 = arith.constant 0 : i32
    return %c0_i32, %c0_i32_0 : i32, i32
  }
  func.func @transform_5(%arg0: i32) -> (i32, i32) {
    %c0_i32 = arith.constant 0 : i32
    %c0_i32_0 = arith.constant 0 : i32
    %c0_i32_1 = arith.constant 0 : i32
    return %c0_i32, %c0_i32_0 : i32, i32
  }
  func.func @transform_6(%arg0: i32) -> (i32, i32) {
    %c0_i32 = arith.constant 0 : i32
    %c0_i32_0 = arith.constant 0 : i32
    %c0_i32_1 = arith.constant 0 : i32
    return %c0_i32, %c0_i32_0 : i32, i32
  }
  func.func @transform_7(%arg0: i32) -> (i32, i32) {
    %c0_i32 = arith.constant 0 : i32
    %c0_i32_0 = arith.constant 0 : i32
    return %arg0, %c0_i32 : i32, i32
  }
}

</mosaic_0001>

<bundles_post_ra>
// kernel: simple_nn_forward.1
= control target key start
LH: loop header
LB: loop body
LE: loop exit
PB: predicated region body
PF: predicated region fallthrough
CT: control target
= control target key end

     0   :  { %12 = vsyncpa [#allocation3], 0  ;;  %v1113_v41 = vmov 0.0   ;;  %vm1114_vm0 = vmmov 0   ;;  %vm448_vm1 = vcmask 130048   ;;  %vm773_vm2 = vcmask 523264   ;;  %s1423_s0 = inlined_call_operand.vmem [shape: f32[8,784], index: 0, kind: input, shape index: {}]   ;;  %s1424_s1 = inlined_call_operand.vmem [shape: bf16[784,128], index: 1, kind: input, shape index: {}]   ;;  %s1425_s2 = inlined_call_operand.vmem [shape: f32[1,128], index: 2, kind: input, shape index: {}]   ;;  %s1426_s3 = inlined_call_operand.vmem [shape: bf16[128,64], index: 3, kind: input, shape index: {}]   ;;  %s1427_s4 = inlined_call_operand.vmem [shape: f32[1,64], index: 4, kind: input, shape index: {}]   ;;  %s1428_s5 = inlined_call_operand.vmem [shape: bf16[64,10], index: 5, kind: input, shape index: {}]   ;;  %s1429_s6 = inlined_call_operand.vmem [shape: f32[1,10], index: 6, kind: input, shape index: {}]   ;;  %s1430_s7 = inlined_call_operand.hbm [shape: f32[8,10], index: 7, kind: output, shape index: {}]  }
   0x1   :  { %v1028_v0 = vld [vmem:[%s1424_s1 + $0x40] sm:$0xff]   ;;  %v1032_v4 = vld [vmem:[%s1424_s1 + $0x48] sm:$0xff]   ;;  %v1036_v8 = vld [vmem:[%s1424_s1 + $0x50] sm:$0xff]   ;;  %vm818_vm3 = vcmask 80896  }
   0x2   :  { %v1029_v1 = vld [vmem:[%s1424_s1] sm:$0xff]   ;;  %903 = vmatprep.subr.bf16.mxu0 %v1028_v0  ;;  %v1033_v5 = vld [vmem:[%s1424_s1 + $0x8] sm:$0xff]   ;;  %v1037_v9 = vld [vmem:[%s1424_s1 + $0x10] sm:$0xff]  }
   0x3   :  { %v1030_v2 = vld [vmem:[%s1424_s1 + $0xc0] sm:$0xff]   ;;  %904 = vmatpush3.bf16.msra.mxu0 %v1029_v1  ;;  %v1034_v6 = vld [vmem:[%s1424_s1 + $0xc8] sm:$0xff]   ;;  %v1038_v10 = vld [vmem:[%s1424_s1 + $0xd0] sm:$0xff]  }
   0x4   :  { %v1031_v3 = vld [vmem:[%s1424_s1 + $0x80] sm:$0xff]   ;;  %925 = vmatprep.subr.bf16.mxu1 %v1030_v2  ;;  %905 = vmatprep.subr.bf16.mxu0 %v1032_v4  ;;  %v1035_v7 = vld [vmem:[%s1424_s1 + $0x88] sm:$0xff]   ;;  %v1039_v11 = vld [vmem:[%s1424_s1 + $0x90] sm:$0xff]  }
   0x5   :  { %926 = vmatpush3.bf16.msra.mxu1 %v1031_v3  ;;  %v1040_v12 = vld [vmem:[%s1424_s1 + $0x58] sm:$0xff]   ;;  %v1044_v16 = vld [vmem:[%s1424_s1 + $0x60] sm:$0xff]   ;;  %v1048_v20 = vld [vmem:[%s1424_s1 + $0x68] sm:$0xff]  }
   0x6   :  { %927 = vmatprep.subr.bf16.mxu1 %v1034_v6  ;;  %v1041_v13 = vld [vmem:[%s1424_s1 + $0x18] sm:$0xff]   ;;  %v1045_v17 = vld [vmem:[%s1424_s1 + $0x20] sm:$0xff]   ;;  %v1049_v21 = vld [vmem:[%s1424_s1 + $0x28] sm:$0xff]  }
   0x7   :  { %906 = vmatpush3.bf16.msra.mxu0 %v1033_v5  ;;  %v1042_v14 = vld [vmem:[%s1424_s1 + $0xd8] sm:$0xff]   ;;  %v1046_v18 = vld [vmem:[%s1424_s1 + $0xe0] sm:$0xff]   ;;  %v1050_v22 = vld [vmem:[%s1424_s1 + $0xe8] sm:$0xff]  }
   0x8   :  { %907 = vmatprep.subr.bf16.mxu0 %v1036_v8  ;;  %v1043_v15 = vld [vmem:[%s1424_s1 + $0x98] sm:$0xff]   ;;  %v1047_v19 = vld [vmem:[%s1424_s1 + $0xa0] sm:$0xff]   ;;  %v1051_v23 = vld [vmem:[%s1424_s1 + $0xa8] sm:$0xff]  }
   0x9   :  { %928 = vmatpush3.bf16.msra.mxu1 %v1035_v7  ;;  %v1052_v24 = vld [vmem:[%s1424_s1 + $0x70] sm:$0xff]   ;;  %v1056_v28 = vld [vmem:[%s1424_s1 + $0x78] sm:$0xff]   ;;  %v29_v31 = vld [vmem:[%s1423_s0 + $0x8] sm:$0xff] }
   0xa   :  { %929 = vmatprep.subr.bf16.mxu1 %v1038_v10  ;;  %v1053_v25 = vld [vmem:[%s1424_s1 + $0x30] sm:$0xff]   ;;  %v1057_v29 = vld [vmem:[%s1424_s1 + $0x38] sm:$0xff]   ;;  %v36_v32 = vld [vmem:[%s1423_s0 + $0x40] sm:$0xff] }
   0xb   :  { %908 = vmatpush3.bf16.msra.mxu0 %v1037_v9  ;;  %v1054_v26 = vld [vmem:[%s1424_s1 + $0xf0] sm:$0xff]   ;;  %v1058_v30 = vld [vmem:[%s1424_s1 + $0xf8] sm:$0xff]   ;;  %v43_v33 = vpack.c.bf16 %v36_v32, %v29_v31  ;;  %v28_v35 = vld [vmem:[%s1423_s0] sm:$0xff] }
   0xc   :  { %909 = vmatprep.subr.bf16.mxu0 %v1040_v12  ;;  %v1055_v27 = vld [vmem:[%s1424_s1 + $0xb0] sm:$0xff]   ;;  %v1059_v34 = vld [vmem:[%s1424_s1 + $0xb8] sm:$0xff]   ;;  %v1060_v38 = vld [vmem:[%s1424_s1 + $0x140] sm:$0xff]  }
   0xd   :  { %930 = vmatpush3.bf16.msra.mxu1 %v1039_v11  ;;  %v35_v36 = vld [vmem:[%s1423_s0 + $0x38] sm:$0xff]  ;;  %484 = vmatprep.mubr.bf16.mxu0 %v43_v33  ;;  %v38_v40 = vld [vmem:[%s1423_s0 + $0x50] sm:$0xff]  ;;  %v1061_v43 = vld [vmem:[%s1424_s1 + $0x100] sm:$0xff]  }
   0xe   :  { %931 = vmatprep.subr.bf16.mxu1 %v1042_v14  ;;  %v42_v37 = vpack.c.bf16 %v35_v36, %v28_v35  ;;  %v31_v39 = vld [vmem:[%s1423_s0 + $0x18] sm:$0xff]  ;;  %v30_v44 = vld [vmem:[%s1423_s0 + $0x10] sm:$0xff]  ;;  %v37_v45 = vld [vmem:[%s1423_s0 + $0x48] sm:$0xff] }
   0xf   :  { %910 = vmatpush3.bf16.msra.mxu0 %v1041_v13  ;;  %v45_v42 = vpack.c.bf16 %v38_v40, %v31_v39  ;;  %v44_v46 = vpack.c.bf16 %v37_v45, %v30_v44  ;;  %v1062_v47 = vld [vmem:[%s1424_s1 + $0x148] sm:$0xff]   ;;  %v1064_v49 = vld [vmem:[%s1424_s1 + $0x150] sm:$0xff]   ;;  %v1066_v51 = vld [vmem:[%s1424_s1 + $0x158] sm:$0xff]  }
  0x10   :  { %911 = vmatprep.subr.bf16.mxu0 %v1044_v16  ;;  %v1063_v48 = vld [vmem:[%s1424_s1 + $0x108] sm:$0xff]   ;;  %v1065_v50 = vld [vmem:[%s1424_s1 + $0x110] sm:$0xff]   ;;  %v1067_v52 = vld [vmem:[%s1424_s1 + $0x118] sm:$0xff]  }
  0x11   :  { %932 = vmatpush3.bf16.msra.mxu1 %v1043_v15  ;;  %525 = vmatprep.mubr.bf16.mxu1 %v45_v42  ;;  %v1068_v53 = vld [vmem:[%s1424_s1 + $0x160] sm:$0xff]   ;;  %v1070_v55 = vld [vmem:[%s1424_s1 + $0x168] sm:$0xff]   ;;  %v1072_v60 = vld [vmem:[%s1424_s1 + $0x170] sm:$0xff]  }
  0x12   :  { %933 = vmatprep.subr.bf16.mxu1 %v1046_v18  ;;  %v1069_v54 = vld [vmem:[%s1424_s1 + $0x120] sm:$0xff]   ;;  %v1071_v57 = vld [vmem:[%s1424_s1 + $0x128] sm:$0xff]   ;;  %v34_v62 = vld [vmem:[%s1423_s0 + $0x30] sm:$0xff] }
  0x13   :  { %912 = vmatpush3.bf16.msra.mxu0 %v1045_v17  ;;  %v1076_v56 = vld [vmem:[%s1424_s1 + $0x180] sm:$0xff]   ;;  %v33_v58 = vld [vmem:[%s1423_s0 + $0x28] sm:$0xff]  ;;  %v1073_v1 = vld [vmem:[%s1424_s1 + $0x130] sm:$0xff]  }
  0x14   :  { %913 = vmatprep.subr.bf16.mxu0 %v1048_v20  ;;  %v40_v59 = vld [vmem:[%s1423_s0 + $0x60] sm:$0xff]  ;;  %v41_v63 = vld [vmem:[%s1423_s0 + $0x68] sm:$0xff]  ;;  %v1074_v2 = vld [vmem:[%s1424_s1 + $0x178] sm:$0xff]  }
  0x15   :  { %934 = vmatpush3.bf16.msra.mxu1 %v1047_v19  ;;  %v47_v61 = vpack.c.bf16 %v40_v59, %v33_v58  ;;  %v48_v0 = vpack.c.bf16 %v41_v63, %v34_v62  ;;  %v1075_v3 = vld [vmem:[%s1424_s1 + $0x138] sm:$0xff]   ;;  %v32_v4 = vld [vmem:[%s1423_s0 + $0x20] sm:$0xff]  ;;  %v1078_v8 = vld [vmem:[%s1426_s3 + $0x8] sm:$0xff]  }
  0x16   :  { %935 = vmatprep.subr.bf16.mxu1 %v1050_v22  ;;  %v39_v5 = vld [vmem:[%s1423_s0 + $0x58] sm:$0xff]  ;;  %v1077_v7 = vld [vmem:[%s1426_s3] sm:$0xff]   ;;  %v1079_v9 = vld [vmem:[%s1426_s3 + $0x10] sm:$0xff]  }
  0x17   :  { %914 = vmatpush3.bf16.msra.mxu0 %v1049_v21  ;;  %v46_v6 = vpack.c.bf16 %v39_v5, %v32_v4  ;;  %v1080_v10 = vld [vmem:[%s1426_s3 + $0x18] sm:$0xff]   ;;  %v1081_v11 = vld [vmem:[%s1426_s3 + $0x20] sm:$0xff]   ;;  %v1082_v12 = vld [vmem:[%s1426_s3 + $0x28] sm:$0xff]  }
  0x18   :  { %915 = vmatprep.subr.bf16.mxu0 %v1052_v24  ;;  %v1083_v13 = vld [vmem:[%s1426_s3 + $0x30] sm:$0xff]   ;;  %v1084_v14 = vld [vmem:[%s1426_s3 + $0x38] sm:$0xff]   ;;  %v1085_v15 = vld [vmem:[%s1428_s5] sm:$0xff]  }
  0x19   :  { %936 = vmatpush3.bf16.msra.mxu1 %v1051_v23  ;;  %v1086_v16 = vld [vmem:[%s1428_s5 + $0x8] sm:$0xff]   ;;  %v837_v18 = vld [vmem:[%s1425_s2] ss:$0 sm:$0xff] }
  0x1a   :  { %937 = vmatprep.subr.bf16.mxu1 %v1054_v26 }
  0x1b   :  { %916 = vmatpush3.bf16.msra.mxu0 %v1053_v25 }
  0x1c   :  { %917 = vmatprep.subr.bf16.mxu0 %v1056_v28 }
  0x1d   :  { %938 = vmatpush3.bf16.msra.mxu1 %v1055_v27 }
  0x1e   :  { %939 = vmatprep.subr.bf16.mxu1 %v1058_v30 }
  0x1f   :  { %918 = vmatpush3.bf16.msra.mxu0 %v1057_v29 }
  0x20   :  { %947 = vmatprep.subr.bf16.mxu0 %v1060_v38 }
  0x21   :  { %940 = vmatpush3.bf16.msra.mxu1 %v1059_v34 }
  0x22   :  { %985 = vmatprep.subr.bf16.mxu1 %v1113_v41  ;;  %485 = vmatmul.mubr.bf16.vlgmr.msra.gmra.mrb[0].mxu0 %v42_v37 }
  0x23   :  { %948 = vmatpush3.bf16.msra.mxu0 %v1061_v43  ;;  %566 = vmatprep.mubr.bf16.mxu0 %v47_v61 }
  0x24   :  { %526 = vmatmul.mubr.bf16.vlgmr.msra.gmra.mrb[0].mxu1 %v44_v46  ;;  %949 = vmatprep.subr.bf16.mxu0 %v1062_v47 }
  0x25   :  { %987 = vmatprep.mubr.msk.bf16.mxu1 %vm1114_vm0, %v1113_v41  ;;  %986 = vmatpush3.bf16.msra.mxu1 %v1076_v56 }
  0x26   :  { %991 = vmatprep.subr.bf16.mxu1 %v1113_v41 }
  0x27   :  { %950 = vmatpush3.bf16.msra.mxu0 %v1063_v48 }
  0x28   :  { %951 = vmatprep.subr.bf16.mxu0 %v1064_v49 }
  0x2b   :  { %952 = vmatpush3.bf16.msra.mxu0 %v1065_v50 }
  0x2c   :  { %953 = vmatprep.subr.bf16.mxu0 %v1066_v51  ;;  %988 = vmatmul.mubr.msk.bf16.vlgmr.msra.gmra.mrb[4].mxu1 %vm448_vm1, %v48_v0 }
  0x2d   :  { %1007 = vmatprep.mubr.msk.bf16.mxu1 %vm1114_vm0, %v1113_v41  ;;  %992 = vmatpush3.bf16.msra.mxu1 %v1077_v7 }
  0x2e   :  { %993 = vmatprep.subr.bf16.mxu1 %v1113_v41 }
  0x2f   :  { %954 = vmatpush3.bf16.msra.mxu0 %v1067_v52  ;;  %v1087_v52 = vld [vmem:[%s1428_s5 + $0x10] sm:$0xff]  }
  0x30   :  { %955 = vmatprep.subr.bf16.mxu0 %v1068_v53  ;;  %v1088_v53 = vld [vmem:[%s1428_s5 + $0x18] sm:$0xff]  }
  0x31   :  { %994 = vmatpush3.bf16.msra.mxu1 %v1078_v8 }
  0x32   :  { %995 = vmatprep.subr.bf16.mxu1 %v1113_v41 }
  0x33   :  { %956 = vmatpush3.bf16.msra.mxu0 %v1069_v54  ;;  %v888_v54 = vld [vmem:[%s1427_s4] ss:$0 sm:$0xff] }
  0x34   :  { %957 = vmatprep.subr.bf16.mxu0 %v1070_v55 }
  0x35   :  { %996 = vmatpush3.bf16.msra.mxu1 %v1079_v9 }
  0x36   :  { %997 = vmatprep.subr.bf16.mxu1 %v1113_v41 }
  0x37   :  { %958 = vmatpush3.bf16.msra.mxu0 %v1071_v57 }
  0x38   :  { %959 = vmatprep.subr.bf16.mxu0 %v1072_v60 }
  0x39   :  { %998 = vmatpush3.bf16.msra.mxu1 %v1080_v10 }
  0x3a   :  { %999 = vmatprep.subr.bf16.mxu1 %v1113_v41 }
  0x3b   :  { %960 = vmatpush3.bf16.msra.mxu0 %v1073_v1 }
  0x3c   :  { %961 = vmatprep.subr.bf16.mxu0 %v1074_v2 }
  0x3d   :  { %1000 = vmatpush3.bf16.msra.mxu1 %v1081_v11 }
  0x3e   :  { %1001 = vmatprep.subr.bf16.mxu1 %v1113_v41 }
  0x3f   :  { %962 = vmatpush3.bf16.msra.mxu0 %v1075_v3 }
  0x40   :  { %1011 = vmatprep.subr.bf16.mxu0 %v1113_v41 }
  0x41   :  { %1002 = vmatpush3.bf16.msra.mxu1 %v1082_v12 }
  0x42   :  { %567 = vmatmul.mubr.bf16.vlgmr.msra.gmra.mrb[4].mxu0 %v46_v6  ;;  %1003 = vmatprep.subr.bf16.mxu1 %v1113_v41 }
  0x43   :  { %1019 = vmatprep.mubr.msk.bf16.mxu0 %vm1114_vm0, %v1113_v41  ;;  %1012 = vmatpush3.bf16.msra.mxu0 %v1085_v15 }
  0x44   :  { %1013 = vmatprep.subr.bf16.mxu0 %v1113_v41 }
  0x45   :  { %1004 = vmatpush3.bf16.msra.mxu1 %v1083_v13 }
  0x46   :  { %1005 = vmatprep.subr.bf16.mxu1 %v1113_v41 }
  0x47   :  { %1014 = vmatpush3.bf16.msra.mxu0 %v1086_v16 }
  0x48   :  { %1015 = vmatprep.subr.bf16.mxu0 %v1113_v41 }
  0x49   :  { %1006 = vmatpush3.bf16.msra.mxu1 %v1084_v14 }
  0x4b   :  { %1016 = vmatpush3.bf16.msra.mxu0 %v1087_v52 }
  0x4c   :  { %1017 = vmatprep.subr.bf16.mxu0 %v1113_v41  ;;  %v897_v41 = vld [vmem:[%s1429_s6] ss:$0 sm:$0xff] }
  0x4f   :  { %1018 = vmatpush3.bf16.msra.mxu0 %v1088_v53 }
  0xf5   :  { %v919_v17 = vpop.f32.mrb[0].mxu0 }
  0xf6   :  { %v920_v19 = vpop.f32.mrb[1].mxu0 }
  0xf7   :  { %v921_v20 = vadd.f32 %v920_v19, %v919_v17  ;;  %v922_v21 = vpop.f32.mrb[2].mxu0  ;;  %v941_v22 = vpop.f32.mrb[0].mxu1 }
  0xf8   :  { %v923_v23 = vpop.f32.mrb[3].mxu0  ;;  %v942_v26 = vpop.f32.mrb[1].mxu1 }
  0xf9   :  { %v487_v24 = vadd.f32 %v921_v20, %v837_v18  ;;  %v924_v25 = vadd.f32 %v923_v23, %v922_v21  ;;  %v943_v27 = vadd.f32 %v942_v26, %v941_v22  ;;  %v944_v28 = vpop.f32.mrb[2].mxu1 }
  0xfa   :  { %v945_v30 = vpop.f32.mrb[3].mxu1 }
  0xfb   :  { %v490_v29 = vadd.f32 %v924_v25, %v837_v18  ;;  %v528_v31 = vadd.f32 %v943_v27, %v487_v24  ;;  %v946_v32 = vadd.f32 %v945_v30, %v944_v28 }
  0xfd   :  { %v531_v33 = vadd.f32 %v946_v32, %v490_v29 }
  0xff   :  { %v609_v34 = vpop.f32.mrb[4].mxu1 }
 0x100   :  { %v989_v35 = vpop.f32.mrb[5].mxu1 }
 0x101   :  { %v612_v36 = vpop.f32.mrb[6].mxu1 }
 0x102   :  { %v990_v37 = vpop.f32.mrb[7].mxu1 }
 0x115   :  { %v963_v38 = vpop.f32.mrb[4].mxu0 }
 0x116   :  { %v964_v39 = vpop.f32.mrb[5].mxu0 }
 0x117   :  { %v965_v40 = vadd.f32 %v964_v39, %v963_v38  ;;  %v966_v42 = vpop.f32.mrb[6].mxu0 }
 0x118   :  { %v967_v43 = vpop.f32.mrb[7].mxu0 }
 0x119   :  { %v569_v44 = vadd.f32 %v965_v40, %v528_v31  ;;  %v968_v45 = vadd.f32 %v967_v43, %v966_v42 }
 0x11b   :  { %v610_v46 = vadd.f32 %v609_v34, %v569_v44  ;;  %v572_v47 = vadd.f32 %v968_v45, %v531_v33 }
 0x11d   :  { %v613_v48 = vadd.f32 %v612_v36, %v572_v47  ;;  %v616_v49 = vmax.f32 %v610_v46, 0.0 }
 0x11f   :  { %v617_v50 = vmax.f32 %v613_v48, 0.0 }
 0x121   :  { %v618_v51 = vpack.c.bf16 %v617_v50, %v616_v49 }
 0x123   :  { %1008 = vmatmul.mubr.bf16.vlgmr.msra.gmra.mrb[8].mxu1 %v618_v51 }
 0x1f6   :  { %v724_v55 = vpop.f32.mrb[8].mxu1 }
 0x1f7   :  { %v725_v56 = vadd.f32 %v888_v54, %v724_v55  ;;  %v1009_v57 = vpop.f32.mrb[9].mxu1 }
 0x1f8   :  { %v727_v58 = vpop.f32.mrb[10].mxu1 }
 0x1f9   :  { %v728_v59 = vadd.f32 %v888_v54, %v727_v58  ;;  %v1010_v60 = vpop.f32.mrb[11].mxu1  ;;  %v731_v61 = vmax.f32 %v725_v56, 0.0 }
 0x1fb   :  { %v732_v62 = vmax.f32 %v728_v59, 0.0 }
 0x1fd   :  { %v733_v63 = vpack.c.bf16 %v732_v62, %v731_v61 }
 0x1ff   :  { %1020 = vmatmul.mubr.msk.bf16.vlgmr.msra.gmra.mrb[8].mxu0 %vm773_vm2, %v733_v63 }
 0x2d2   :  { %v811_v0 = vpop.f32.mrb[8].mxu0 }
 0x2d3   :  { %v812_v1 = vadd.f32 %v897_v41, %v811_v0  ;;  %v1021_v2 = vpop.f32.mrb[9].mxu0 }
 0x2d4   :  { %v814_v3 = vpop.f32.mrb[10].mxu0 }
 0x2d5   :  { %819 = vst.msk [vmem:[#allocation2] sm:$0xff] %vm818_vm3, %v812_v1  ;;  %v815_v4 = vadd.f32 %v897_v41, %v814_v3  ;;  %v1022_v5 = vpop.f32.mrb[11].mxu0 }
 0x2d7   :  { %820 = vst.msk [vmem:[#allocation2 + $0x8] sm:$0xff] %vm818_vm3, %v815_v4 }
 0x2d8   :  { %825 = vsyncadd [#allocation3], 128  ;;  %s1115_s4 = smov [#allocation2]  }
 0x2d9   :  { %s826_s5 = sshll.u32 %s1115_s4, 4  ;;  %s827_s5 = int_to_ptr.vmem [resolvable:$true] %s826_s5 }
 0x2da   :  { %s1089_s14 = scalar_lea.vmem %s827_s5, 128  ;;  %s1093_s0 = scalar_lea.vmem %s827_s5, 256 }
 0x2db   :  { %p1090_p0 = scmp.ne.s32.totalorder %s827_s5, %s1089_s14  ;;  %p1094_p1 = scmp.lt.s32.totalorder %s827_s5, %s827_s5 }
 0x2dc   :  { %p1095_p2 = scmp.lt.s32.totalorder %s1093_s0, %s1089_s14 }
 0x2de   :  { %p1096_p3 = por %p1095_p2, %p1094_p1 }
 0x2e0   :  { %p1097_p4 = pnand %p1096_p3, %p1090_p0 }
 0x2e2   :  { %1100 = shalt.err (!%p1097_p4)
}
 0x2e3   :  { %s1101_s16 = scalar_lea.hbm %s1430_s7, 128 }
 0x2e4   :  { %p1102_p5 = scmp.ne.s32.totalorder %s1430_s7, %s1101_s16  ;;  %p1105_p6 = scmp.lt.u32.totalorder %s1101_s16, %s1430_s7 }
 0x2e6   :  { %p1107_p7 = pnand %p1105_p6, %p1102_p5 }
 0x2e8   :  { %1110 = shalt.err (!%p1107_p7)
}
 0x2e9   :  { %s1116_s21 = smov 128   ;;  %s1117_s22 = smov 8  }
 0x2ea   :  { %832 = dma.vmem_to_hbm [thread:$0]  %s827_s5, 128, %s1430_s7, [#allocation3], %s1116_s21, %s1116_s21, %s1117_s22  }
 0x2eb   :  { %1111 = dma.done.wait [#allocation3], 256  }
 0x2ec   :  { %1112 = vsyncadd [#allocation3], 4294967040 }
 0x2ed   :  { %836 = vsyncpa [#allocation3], 1 }

</bundles_post_ra>
